<compile_context>
chip_gen: v6e
topology: v6e:2x2x1
jax: 0.10.0
libtpu: 0.0.40
codegen_flags: <defaults>
</compile_context>

<pallas_src>
import math

import jax
import jax.numpy as jnp
from jax.experimental import pallas as pl
from jax.experimental.pallas import tpu as pltpu


def _vmem_capacity_bytes():
    """Physical VMEM of this generation; conservative fallback (v7x = 64 MiB)."""
    try:
        cap = int(pltpu.get_tpu_info().vmem_capacity_bytes)
        if cap > 0:
            return cap
    except Exception:
        pass
    return 64 * 1024 * 1024


def _make_concat_kernel(channels, offsets):
    """Kernel: per-input direct sub-slice store into the output block."""

    def kernel(*refs):
        *x_refs, o_ref = refs
        for x_ref, c, off in zip(x_refs, channels, offsets):
            o_ref[:, off:off + c, :] = x_ref[...].astype(o_ref.dtype)

    return kernel


def _pick_tiles(outer, inner, c_total, itemsize, budget_bytes):
    """Pick (TILE_O, TILE_INNER) so double-buffered in+out blocks fit budget.

    Live bytes per grid step ~= 4 * TILE_O * c_total * tile * itemsize
    (inputs sum to c_total rows + output c_total rows, each double-buffered).
    """
    slab_elems = max(128, budget_bytes // (4 * max(1, c_total) * max(1, itemsize)))

    if inner <= slab_elems:
        tile = inner                                   # full lane extent (always legal)
    else:
        tile = max(128, (slab_elems // 128) * 128)     # 128-aligned; partial tail block

    tile_o = max(1, min(outer, slab_elems // max(1, tile)))

    # v7x megacore: ensure >=2 grid steps on a parallel axis when the copy is
    # large enough to be worth splitting across both TensorCores.
    block_bytes = tile_o * c_total * tile * itemsize
    if pl.cdiv(outer, tile_o) * pl.cdiv(inner, tile) == 1 and block_bytes >= (256 << 10):
        if outer >= 2:
            tile_o = pl.cdiv(outer, 2)
        elif inner >= 256:
            tile = ((pl.cdiv(inner, 2) + 127) // 128) * 128

    return tile_o, tile


def concat_forward(xs, dimension=1):
    """torch.cat(xs, dim=dimension) via a Pallas copy kernel."""
    xs = list(xs)
    if not xs:
        raise ValueError("concat_forward needs at least one input")

    ndim = xs[0].ndim
    if ndim == 0:
        raise ValueError("cannot concatenate zero-dimensional tensors")
    d = dimension % ndim
    out_dtype = jnp.result_type(*[x.dtype for x in xs])

    base = xs[0].shape
    for x in xs:
        if x.ndim != ndim:
            raise ValueError("all inputs must have the same rank")
        for ax in range(ndim):
            if ax != d and x.shape[ax] != base[ax]:
                raise ValueError("non-concat dimensions must match")

    channels_all = [int(x.shape[d]) for x in xs]
    c_total = sum(channels_all)
    out_shape = list(base)
    out_shape[d] = c_total
    out_shape = tuple(out_shape)

    # torch.cat tolerates empty tensors; a 0-sized BlockSpec dim won't lower,
    # so drop them here (they contribute nothing to the output).
    keep = [(x, c) for x, c in zip(xs, channels_all) if c > 0]
    if not keep:
        return jnp.zeros(out_shape, dtype=out_dtype)
    xs = [x for x, _ in keep]
    channels = [c for _, c in keep]

    outer = int(math.prod(base[:d]))
    inner = int(math.prod(base[d + 1:]))

    # Fold to 3D (outer, C_i, inner): concat axis on sublanes, contiguous axis
    # on lanes.  No wrapper-side dtype cast (fused into the kernel store).
    xs3 = [x.reshape(outer, c, inner) for x, c in zip(xs, channels)]

    itemsize = jnp.dtype(out_dtype).itemsize
    vmem_cap = _vmem_capacity_bytes()
    # Per-generation budget for live double-buffered blocks: big enough to
    # amortize the ~0.35us/step pipeline overhead with long linear DMAs, but
    # never more than a quarter of physical VMEM (v7x-safe).
    budget = min(16 << 20, vmem_cap // 4)
    tile_o, tile = _pick_tiles(outer, inner, c_total, itemsize, budget)
    grid = (pl.cdiv(outer, tile_o), pl.cdiv(inner, tile))

    offsets = []
    off = 0
    for c in channels:
        offsets.append(off)
        off += c

    in_specs = [
        pl.BlockSpec((tile_o, c, tile), lambda o, t: (o, 0, t)) for c in channels
    ]
    out_specs = pl.BlockSpec((tile_o, c_total, tile), lambda o, t: (o, 0, t))

    read_bytes = sum(int(x.size) * jnp.dtype(x.dtype).itemsize for x in xs3)
    write_bytes = outer * c_total * inner * itemsize
    vmem_limit = int(min(3 * vmem_cap // 4, max(32 << 20, 4 * budget)))

    out3 = pl.pallas_call(
        _make_concat_kernel(channels, offsets),
        out_shape=jax.ShapeDtypeStruct((outer, c_total, inner), out_dtype),
        grid_spec=pl.GridSpec(grid=grid, in_specs=in_specs, out_specs=out_specs),
        compiler_params=pltpu.CompilerParams(
            dimension_semantics=("parallel", "parallel"),
            vmem_limit_bytes=vmem_limit),
        cost_estimate=pl.CostEstimate(
            flops=0, transcendentals=0, bytes_accessed=read_bytes + write_bytes),
    )(*xs3)

    return out3.reshape(out_shape)


class Concat:
    """JAX/Pallas equivalent of the PyTorch Concat(dimension) module."""

    def __init__(self, dimension=1):
        self.d = dimension

    def __call__(self, x):
        return concat_forward(x, self.d)


if __name__ == "__main__":
    key = jax.random.PRNGKey(0)
    k1, k2 = jax.random.split(key)
    # Two NCHW feature maps concatenated along channels (YOLO-style Concat):
    # batch=2, channels 8 and 16, spatial 16x16 -> output (2, 24, 16, 16).
    x1 = jax.random.normal(k1, (2, 8, 16, 16), dtype=jnp.float32)
    x2 = jax.random.normal(k2, (2, 16, 16, 16), dtype=jnp.float32)

    mod = Concat(dimension=1)
    y = mod([x1, x2])
    y = jax.block_until_ready(y)

    ref = jnp.concatenate([x1, x2], axis=1)
    assert y.shape == ref.shape == (2, 24, 16, 16)
    assert y.dtype == ref.dtype
    assert bool(jnp.all(y == ref))

    print("KERNEL_OK")
</pallas_src>

<mosaic_0001>
module attributes {stable_mosaic.version = 11 : i64} {
  func.func @kernel(%arg0: i32, %arg1: i32, %arg2: memref<2x8x256xf32, #tpu.memory_space<vmem>>, %arg3: memref<2x16x256xf32, #tpu.memory_space<vmem>>, %arg4: memref<2x24x256xf32, #tpu.memory_space<vmem>>) attributes {dimension_semantics = [#tpu.dimension_semantics<parallel>, #tpu.dimension_semantics<parallel>], iteration_bounds = array<i64: 1, 1>, scalar_prefetch = 0 : i64, scratch_operands = 0 : i64, tpu.core_type = #tpu.core_type<tc>, window_params = [{transform_indices = @transform_0, window_bounds = array<i64: 2, 8, 256>}, {transform_indices = @transform_1, window_bounds = array<i64: 2, 16, 256>}, {transform_indices = @transform_2, window_bounds = array<i64: 2, 24, 256>}]} {
    %c0 = arith.constant 0 : index
    %c0_0 = arith.constant 0 : index
    %c0_1 = arith.constant 0 : index
    %0 = vector.load %arg2[%c0, %c0_0, %c0_1] : memref<2x8x256xf32, #tpu.memory_space<vmem>>, vector<2x8x256xf32>
    %c0_2 = arith.constant 0 : index
    %c0_3 = arith.constant 0 : index
    %c0_4 = arith.constant 0 : index
    %1 = vector.load %arg4[%c0_2, %c0_3, %c0_4] : memref<2x24x256xf32, #tpu.memory_space<vmem>>, vector<2x8x256xf32>
    tpu.vector_store %arg4[%c0_2, %c0_3, %c0_4], %0 {strides = array<i32>} : memref<2x24x256xf32, #tpu.memory_space<vmem>>, vector<2x8x256xf32>,
    %c0_5 = arith.constant 0 : index
    %c0_6 = arith.constant 0 : index
    %c0_7 = arith.constant 0 : index
    %2 = vector.load %arg3[%c0_5, %c0_6, %c0_7] : memref<2x16x256xf32, #tpu.memory_space<vmem>>, vector<2x16x256xf32>
    %c0_8 = arith.constant 0 : index
    %c8 = arith.constant 8 : index
    %c0_9 = arith.constant 0 : index
    %3 = vector.load %arg4[%c0_8, %c8, %c0_9] : memref<2x24x256xf32, #tpu.memory_space<vmem>>, vector<2x16x256xf32>
    tpu.vector_store %arg4[%c0_8, %c8, %c0_9], %2 {strides = array<i32>} : memref<2x24x256xf32, #tpu.memory_space<vmem>>, vector<2x16x256xf32>,
    return
  }
  func.func @transform_0(%arg0: i32, %arg1: i32) -> (i32, i32, i32) {
    %c0_i32 = arith.constant 0 : i32
    %c0_i32_0 = arith.constant 0 : i32
    return %arg0, %c0_i32, %arg1 : i32, i32, i32
  }
  func.func @transform_1(%arg0: i32, %arg1: i32) -> (i32, i32, i32) {
    %c0_i32 = arith.constant 0 : i32
    %c0_i32_0 = arith.constant 0 : i32
    return %arg0, %c0_i32, %arg1 : i32, i32, i32
  }
  func.func @transform_2(%arg0: i32, %arg1: i32) -> (i32, i32, i32) {
    %c0_i32 = arith.constant 0 : i32
    %c0_i32_0 = arith.constant 0 : i32
    return %arg0, %c0_i32, %arg1 : i32, i32, i32
  }
}

</mosaic_0001>

<bundles_post_ra>
// kernel: tpu_custom_call.1
= control target key start
LH: loop header
LB: loop body
LE: loop exit
PB: predicated region body
PF: predicated region fallthrough
CT: control target
= control target key end

     0   :  { %7 = vsyncpa [#allocation3], 0  ;;  %s191_s0 = inlined_call_operand.hbm [shape: f32[2,8,256], index: 0, kind: input, shape index: {}]   ;;  %s192_s1 = inlined_call_operand.hbm [shape: f32[2,16,256], index: 1, kind: input, shape index: {}]   ;;  %s193_s2 = inlined_call_operand.hbm [shape: f32[2,24,256], index: 2, kind: output, shape index: {}]  }
   0x1   :  { %8 = vsyncpa [#allocation6], 0 }
   0x2   :  { %9 = vsyncpa [#allocation4], 0  ;;  %s153_s9 = smov [#allocation2]  }
   0x3   :  { %s15_s10 = sshll.u32 %s153_s9, 4  ;;  %s16_s10 = int_to_ptr.vmem [resolvable:$true] %s15_s10 }
   0x4   :  { %s95_s11 = scalar_lea.vmem %s16_s10, 512  ;;  %p100_p1 = scmp.lt.s32.totalorder %s16_s10, %s16_s10 }
   0x5   :  { %p96_p0 = scmp.ne.s32.totalorder %s16_s10, %s95_s11  ;;  %p101_p2 = scmp.lt.s32.totalorder %s95_s11, %s95_s11 }
   0x7   :  { %p102_p3 = por %p101_p2, %p100_p1 }
   0x9   :  { %p103_p4 = pnand %p102_p3, %p96_p0 }
   0xb   :  { %106 = shalt.err (!%p103_p4)
}
   0xc   :  { %s154_s12 = smov 256   ;;  %s155_s13 = smov 16  }
   0xd   :  { %21 = dma.hbm_to_vmem [thread:$0]  %s191_s0, 512, %s16_s10, [#allocation3], %s154_s12, %s154_s12, %s155_s13  }
   0xe   :  { %s156_s16 = smov [#allocation5]  }
   0xf   :  { %s27_s17 = sshll.u32 %s156_s16, 4  ;;  %s28_s17 = int_to_ptr.vmem [resolvable:$true] %s27_s17 }
  0x10   :  { %s115_s18 = scalar_lea.vmem %s28_s17, 1024  ;;  %p120_p6 = scmp.lt.s32.totalorder %s28_s17, %s28_s17 }
  0x11   :  { %p116_p5 = scmp.ne.s32.totalorder %s28_s17, %s115_s18  ;;  %p121_p7 = scmp.lt.s32.totalorder %s115_s18, %s115_s18 }
  0x13   :  { %p122_p8 = por %p121_p7, %p120_p6 }
  0x15   :  { %p123_p9 = pnand %p122_p8, %p116_p5 }
  0x17   :  { %126 = shalt.err (!%p123_p9)
}
  0x18   :  { %33 = dma.hbm_to_vmem [thread:$0]  %s192_s1, 1024, %s28_s17, [#allocation6], %s154_s12, %s154_s12, %s155_s13  }
  0x19   :  { %147 = dma.done.wait [#allocation3], 512  }
  0x1a   :  { %148 = vsyncadd [#allocation3], 4294966784 }
  0x1b   :  { %149 = dma.done.wait [#allocation6], 1024  }
  0x1c   :  { %150 = vsyncadd [#allocation6], 4294966272  ;;  %s157_s0 = smov [#allocation7]   ;;  %v40_v0 = vld [vmem:[#allocation2] sm:$0xff]  ;;  %v41_v1 = vld [vmem:[#allocation2 + $0x8] sm:$0xff] }
  0x1d   :  { %s69_s21 = sshll.u32 %s157_s0, 4  ;;  %v42_v2 = vld [vmem:[#allocation2 + $0x10] sm:$0xff]  ;;  %44 = vst [vmem:[#allocation7] sm:$0xff] %v40_v0  ;;  %45 = vst [vmem:[#allocation7 + $0x8] sm:$0xff] %v41_v1  ;;  %v43_v3 = vld [vmem:[#allocation2 + $0x18] sm:$0xff]  ;;  %s70_s21 = int_to_ptr.vmem [resolvable:$true] %s69_s21 }
  0x1e   :  { %46 = vst [vmem:[#allocation7 + $0x30] sm:$0xff] %v42_v2  ;;  %v48_v4 = vld [vmem:[#allocation5] sm:$0xff]  ;;  %v49_v5 = vld [vmem:[#allocation5 + $0x8] sm:$0xff]  ;;  %47 = vst [vmem:[#allocation7 + $0x38] sm:$0xff] %v43_v3  ;;  %s127_s1 = scalar_lea.vmem %s70_s21, 1536  ;;  %p132_p11 = scmp.lt.s32.totalorder %s70_s21, %s70_s21 }
  0x1f   :  { %56 = vst [vmem:[#allocation7 + $0x10] sm:$0xff] %v48_v4  ;;  %57 = vst [vmem:[#allocation7 + $0x18] sm:$0xff] %v49_v5  ;;  %v50_v6 = vld [vmem:[#allocation5 + $0x10] sm:$0xff]  ;;  %v51_v7 = vld [vmem:[#allocation5 + $0x18] sm:$0xff]  ;;  %p128_p10 = scmp.ne.s32.totalorder %s70_s21, %s127_s1  ;;  %p133_p12 = scmp.lt.s32.totalorder %s127_s1, %s127_s1 }
  0x20   :  { %v52_v8 = vld [vmem:[#allocation5 + $0x20] sm:$0xff]  ;;  %58 = vst [vmem:[#allocation7 + $0x20] sm:$0xff] %v50_v6  ;;  %59 = vst [vmem:[#allocation7 + $0x28] sm:$0xff] %v51_v7  ;;  %v53_v9 = vld [vmem:[#allocation5 + $0x28] sm:$0xff] }
  0x21   :  { %60 = vst [vmem:[#allocation7 + $0x40] sm:$0xff] %v52_v8  ;;  %v54_v10 = vld [vmem:[#allocation5 + $0x30] sm:$0xff]  ;;  %v55_v11 = vld [vmem:[#allocation5 + $0x38] sm:$0xff]  ;;  %61 = vst [vmem:[#allocation7 + $0x48] sm:$0xff] %v53_v9  ;;  %p134_p13 = por %p133_p12, %p132_p11 }
  0x22   :  { %62 = vst [vmem:[#allocation7 + $0x50] sm:$0xff] %v54_v10  ;;  %63 = vst [vmem:[#allocation7 + $0x58] sm:$0xff] %v55_v11 }
  0x23   :  { %p135_p0 = pnand %p134_p13, %p128_p10 }
  0x25   :  { %138 = shalt.err (!%p135_p0)
}
  0x26   :  { %75 = dma.vmem_to_hbm [thread:$0]  %s70_s21, 1536, %s193_s2, [#allocation4], %s154_s12, %s154_s12, %s155_s13  }
  0x27   :  { %151 = dma.done.wait [#allocation4], 1536  }
  0x28   :  { %152 = vsyncadd [#allocation4], 4294965760 }
  0x29   :  { %79 = vsyncpa [#allocation3], 1 }
  0x2a   :  { %80 = vsyncpa [#allocation6], 1 }
  0x2b   :  { %81 = vsyncpa [#allocation4], 1 }

</bundles_post_ra>
